<compile_context>
chip_gen: v5e
topology: v5e:2x2
jax: 0.10.0
libtpu: 0.0.40
codegen_flags: <defaults>
</compile_context>

<pallas_src>
import jax
import jax.numpy as jnp
from jax.experimental import pallas as pl
from jax.experimental.pallas import tpu as pltpu


# ----------------------------------------------------------------------------
# Pallas kernel: one fused im2col GEMM (+ bias) per image.
# ----------------------------------------------------------------------------
def _conv_gemm_kernel(w_ref, x_ref, b_ref, o_ref):
    # w_ref: (Cout, Kp)  bf16  -- weights, resident across the whole grid
    # x_ref: (Kp, HW)    bf16  -- this image's im2col slab (lane axis = HW)
    # b_ref: (Cout, 1)   f32
    # o_ref: (Cout, HW)  f32   -- lane-dense output -> unmasked stores
    o_ref[...] = (
        jnp.dot(w_ref[...], x_ref[...], preferred_element_type=jnp.float32)
        + b_ref[...]
    )


def _round_up(v, m):
    return (v + m - 1) // m * m


def conv2d_3x3_same(x_nchw, w_hwio, b):
    """3x3 stride-1 'same' conv, NCHW in/out, as a per-image im2col GEMM."""
    N, Cin, H, W = x_nchw.shape
    Cout = w_hwio.shape[-1]
    HW = H * W
    K = 9 * Cin
    Kp = _round_up(K, 16)   # clean (16, 128) bf16 sublane tiling for x2

    # ---- plain-JAX glue (fused by XLA): zero-pad + per-image im2col.
    #      Taps are stacked per image, so no Cin<->N transpose is needed and
    #      the kernel output reshapes directly to (N, Cout, H, W).
    xp = jnp.pad(x_nchw, ((0, 0), (0, 0), (1, 1), (1, 1)))
    taps = [xp[:, :, kh:kh + H, kw:kw + W]
            for kh in range(3) for kw in range(3)]          # 9 x (N,Cin,H,W)
    x2 = jnp.stack(taps, axis=1).reshape(N, K, HW)          # K order = (kh,kw,cin)
    x2 = jnp.pad(x2, ((0, 0), (0, Kp - K), (0, 0))).astype(jnp.bfloat16)

    # weights (3,3,Cin,Cout) -> (Cout, K) matching the (kh,kw,cin) K order,
    # zero-padded along K to match x2.
    w2 = jnp.transpose(w_hwio, (3, 0, 1, 2)).reshape(Cout, K)
    w2 = jnp.pad(w2, ((0, 0), (0, Kp - K))).astype(jnp.bfloat16)
    b2 = b.reshape(Cout, 1).astype(jnp.float32)

    cost = pl.CostEstimate(
        flops=2 * N * HW * Kp * Cout,
        transcendentals=0,
        bytes_accessed=2 * (N * Kp * HW + Cout * Kp) + 4 * (Cout + N * Cout * HW),
    )

    out = pl.pallas_call(
        _conv_gemm_kernel,
        out_shape=jax.ShapeDtypeStruct((N, Cout, HW), jnp.float32),
        grid=(N,),   # one image per step: DMA of image n+1 overlaps matmul of n
        in_specs=[
            pl.BlockSpec((Cout, Kp), lambda n: (0, 0)),                 # resident
            pl.BlockSpec((pl.Squeezed(), Kp, HW), lambda n: (n, 0, 0)),
            pl.BlockSpec((Cout, 1), lambda n: (0, 0)),                  # resident
        ],
        out_specs=pl.BlockSpec((pl.Squeezed(), Cout, HW), lambda n: (n, 0, 0)),
        cost_estimate=cost,
        compiler_params=pltpu.CompilerParams(
            # N axis is independent -> shards one image per TensorCore on v7x.
            dimension_semantics=("parallel",)),
    )(w2, x2, b2)

    # (N, Cout, HW) -> (N, Cout, H, W): pure reshape, no transpose.
    return out.reshape(N, Cout, H, W)


# ----------------------------------------------------------------------------
# Deterministic parameter init for the synthetic inner model.
# ----------------------------------------------------------------------------
def init_params(key, cin=4, cmid=8, cout=8):
    k1, k2, k3, k4 = jax.random.split(key, 4)
    scale1 = 1.0 / jnp.sqrt(cin * 9.0)
    scale2 = 1.0 / jnp.sqrt(cmid * 9.0)
    return {
        # conv weights stored as (kh, kw, Cin, Cout).
        "w1": scale1 * jax.random.normal(k1, (3, 3, cin, cmid), jnp.float32),
        "b1": scale1 * jax.random.normal(k2, (cmid,), jnp.float32),
        "w2": scale2 * jax.random.normal(k3, (3, 3, cmid, cout), jnp.float32),
        "b2": scale2 * jax.random.normal(k4, (cout,), jnp.float32),
    }


# ----------------------------------------------------------------------------
# ModelWithLayerOutput.forward equivalent:
#   run the inner model, return the hooked layer ("conv1") output, NCHW.
# ----------------------------------------------------------------------------
@jax.jit
def model_with_layer_output_forward(x_nchw, params):
    conv1_out = conv2d_3x3_same(x_nchw, params["w1"], params["b1"])  # hooked layer
    h = jax.nn.relu(conv1_out)
    # Rest of the inner model; its result is unused by the hook wrapper, so jit
    # dead-code-eliminates it (the returned value is identical either way).
    # TODO(synk): no side-effect mechanism to force the unused tail to execute;
    # fusing relu+conv2 as a second out_ref of the same kernel would force it.
    _ = conv2d_3x3_same(h, params["w2"], params["b2"])
    return conv1_out


if __name__ == "__main__":
    key = jax.random.PRNGKey(0)
    kx, kp = jax.random.split(key)
    x = jax.random.normal(kx, (2, 4, 16, 16), jnp.float32)   # NCHW like PyTorch
    params = init_params(kp)

    out = model_with_layer_output_forward(x, params)
    out = jax.block_until_ready(out)

    assert out.shape == (2, 8, 16, 16), out.shape
    assert bool(jnp.all(jnp.isfinite(out)))

    # Correctness cross-check against plain-JAX f32 conv (same semantics).
    # Tolerance is loosened because the kernel's operands are bf16 (f32 accum).
    ref = jax.lax.conv_general_dilated(
        x, jnp.transpose(params["w1"], (3, 2, 0, 1)),
        window_strides=(1, 1), padding="SAME",
        dimension_numbers=("NCHW", "OIHW", "NCHW"),
    ) + params["b1"].reshape(1, -1, 1, 1)
    assert bool(jnp.allclose(out, ref, atol=5e-2, rtol=5e-2))

    print("KERNEL_OK")
</pallas_src>

<mosaic_0001>
module attributes {stable_mosaic.version = 11 : i64} {
  func.func @_conv_gemm_kernel(%arg0: i32, %arg1: memref<8x48xbf16, #tpu.memory_space<vmem>>, %arg2: memref<1x48x256xbf16, #tpu.memory_space<vmem>>, %arg3: memref<8x1xf32, #tpu.memory_space<vmem>>, %arg4: memref<1x8x256xf32, #tpu.memory_space<vmem>>) attributes {dimension_semantics = [#tpu.dimension_semantics<parallel>], iteration_bounds = array<i64: 2>, scalar_prefetch = 0 : i64, scratch_operands = 0 : i64, tpu.core_type = #tpu.core_type<tc>, window_params = [{pipeline_mode = #tpu.pipeline_mode<synchronous>, transform_indices = @transform_0, window_bounds = array<i64: 8, 48>}, {transform_indices = @transform_1, window_bounds = array<i64: 1, 48, 256>}, {pipeline_mode = #tpu.pipeline_mode<synchronous>, transform_indices = @transform_2, window_bounds = array<i64: 8, 1>}, {transform_indices = @transform_3, window_bounds = array<i64: 1, 8, 256>}]} {
    %c0 = arith.constant 0 : index
    %c0_0 = arith.constant 0 : index
    %0 = vector.load %arg1[%c0, %c0_0] : memref<8x48xbf16, #tpu.memory_space<vmem>>, vector<8x48xbf16>
    %c0_1 = arith.constant 0 : index
    %c0_2 = arith.constant 0 : index
    %c0_3 = arith.constant 0 : index
    %1 = vector.load %arg2[%c0_1, %c0_2, %c0_3] : memref<1x48x256xbf16, #tpu.memory_space<vmem>>, vector<1x48x256xbf16>
    %2 = vector.shape_cast %1 : vector<1x48x256xbf16> to vector<48x256xbf16>
    %cst = arith.constant dense<0.000000e+00> : vector<8x256xf32>
    %3 = tpu.matmul %0, %2, %cst {dimension_numbers = #tpu.dot_dimension_numbers<[1], [0], [0], [1], [0, 0, 1, 1], [], []>} : vector<8x48xbf16>, vector<48x256xbf16>, vector<8x256xf32> -> vector<8x256xf32>
    %c0_4 = arith.constant 0 : index
    %c0_5 = arith.constant 0 : index
    %4 = vector.load %arg3[%c0_4, %c0_5] : memref<8x1xf32, #tpu.memory_space<vmem>>, vector<8x1xf32>
    %5 = vector.broadcast %4 : vector<8x1xf32> to vector<8x256xf32>
    %6 = arith.addf %3, %5 : vector<8x256xf32>
    %c0_6 = arith.constant 0 : index
    %c0_7 = arith.constant 0 : index
    %c0_8 = arith.constant 0 : index
    %7 = vector.load %arg4[%c0_6, %c0_7, %c0_8] : memref<1x8x256xf32, #tpu.memory_space<vmem>>, vector<1x8x256xf32>
    %8 = vector.shape_cast %7 : vector<1x8x256xf32> to vector<8x256xf32>
    %9 = vector.shape_cast %6 : vector<8x256xf32> to vector<1x8x256xf32>
    tpu.vector_store %arg4[%c0_6, %c0_7, %c0_8], %9 {strides = array<i32>} : memref<1x8x256xf32, #tpu.memory_space<vmem>>, vector<1x8x256xf32>,
    return
  }
  func.func @transform_0(%arg0: i32) -> (i32, i32) {
    %c0_i32 = arith.constant 0 : i32
    %c0_i32_0 = arith.constant 0 : i32
    %c0_i32_1 = arith.constant 0 : i32
    return %c0_i32, %c0_i32_0 : i32, i32
  }
  func.func @transform_1(%arg0: i32) -> (i32, i32, i32) {
    %c0_i32 = arith.constant 0 : i32
    %c0_i32_0 = arith.constant 0 : i32
    %c0_i32_1 = arith.constant 0 : i32
    return %arg0, %c0_i32, %c0_i32_0 : i32, i32, i32
  }
  func.func @transform_2(%arg0: i32) -> (i32, i32) {
    %c0_i32 = arith.constant 0 : i32
    %c0_i32_0 = arith.constant 0 : i32
    %c0_i32_1 = arith.constant 0 : i32
    return %c0_i32, %c0_i32_0 : i32, i32
  }
  func.func @transform_3(%arg0: i32) -> (i32, i32, i32) {
    %c0_i32 = arith.constant 0 : i32
    %c0_i32_0 = arith.constant 0 : i32
    %c0_i32_1 = arith.constant 0 : i32
    return %arg0, %c0_i32, %c0_i32_0 : i32, i32, i32
  }
}

</mosaic_0001>

<bundles_post_ra>
// kernel: model_with_layer_output_forward.1
= control target key start
LH: loop header
LB: loop body
LE: loop exit
PB: predicated region body
PF: predicated region fallthrough
CT: control target
= control target key end

     0   :  { %s385_s12 = smov 0   ;;  %s412_s0 = inlined_call_operand.vmem [shape: bf16[8,48], index: 0, kind: input, shape index: {}]   ;;  %s413_s1 = inlined_call_operand.vmem [shape: bf16[2,48,256], index: 1, kind: input, shape index: {}]   ;;  %s414_s2 = inlined_call_operand.vmem [shape: f32[8,1], index: 2, kind: input, shape index: {}]   ;;  %s415_s3 = inlined_call_operand.vmem [shape: f32[2,8,256], index: 3, kind: output, shape index: {}]  }
   0x1 LB: > { %s302_s13 = sadd.s32 4294967295, %s362_s12   ;;  %p306_p0 = scmp.ge.s32.totalorder %s362_s12, 1  ;;  %s362_s12 = sphi %s385_s12, %s13_s12  }
   0x2   : > { %p137_p1 = scmp.lt.s32.totalorder %s362_s12, 3 }
   0x4   : > { %p138_p2 = pnand %p306_p0, %p137_p1 }
   0x5   : > { %p161_p3 = scmp.lt.s32.totalorder (!%p138_p2), %s302_s13, 1 }
   0x6   : > { %141 = sbr.rel (%p138_p2) target bundleno = 164 (0xa4), region = 32 }
   0xb   : > { %v179_v0 = vld [vmem:[%s414_s2] sm:$0xff]  ;;  %v364_v1 = vmov 0   ;;  %s417_s13 = smov (!%p161_p3, %s302_s13), 1  ;;  %vm215_vm0 = vcmask 392192  }
   0xc   : > { %355 = vset.pattern.permute.xlu0 %v364_v1  ;;  %s345_s16 = smul.u32 48, %s417_s13  ;;  %v172_v20 = vld [vmem:[%s412_s0] sm:$0xf]  ;;  %s338_s22 = sshll.u32 %s417_s13, 4 }
   0xd   : > { %182 = vperm.xlu0 %355, %v179_v0   ;;  %s170_s25 = scalar_lea.vmem %s415_s3, %s338_s22 }
   0xe   : > { %s165_s19 = scalar_lea.vmem %s413_s1, %s345_s16 }
   0xf   : > { %v328_v2 = vld [vmem:[%s165_s19 + $0x20] sm:$0xf]  ;;  %v344_v3 = vld [vmem:[%s165_s19 + $0x24] sm:$0xf0]  ;;  %v343_v4 = vld [vmem:[%s165_s19 + $0x24] sm:$0xf] }
  0x10   : > { %v329_v5 = vor.u32 %v344_v3, %v328_v2  ;;  %v330_v6 = vld [vmem:[%s165_s19 + $0x28] sm:$0xf0]  ;;  %v320_v7 = vld [vmem:[%s165_s19 + $0x10] sm:$0xf]  ;;  %v342_v8 = vld [vmem:[%s165_s19 + $0x14] sm:$0xf0] }
  0x11   : > { %v333_v9 = vor.u32 %v343_v4, %v330_v6  ;;  %v341_v10 = vld [vmem:[%s165_s19 + $0x14] sm:$0xf]  ;;  %v322_v11 = vld [vmem:[%s165_s19 + $0x18] sm:$0xf0]  ;;  %v321_v12 = vor.u32 %v342_v8, %v320_v7  ;;  %v312_v14 = vld [vmem:[%s165_s19] sm:$0xf] }
  0x12   : > { %224 = vmatpush.bf16.msra.mxu0 %v329_v5  ;;  %v325_v13 = vor.u32 %v341_v10, %v322_v11  ;;  %v340_v15 = vld [vmem:[%s165_s19 + $0x4] sm:$0xf0]  ;;  %v339_v16 = vld [vmem:[%s165_s19 + $0x4] sm:$0xf]  ;;  %v314_v17 = vld [vmem:[%s165_s19 + $0x8] sm:$0xf0] }
  0x13   : > { %237 = vmatpush.bf16.msra.mxu1 %v333_v9  ;;  %v313_v18 = vor.u32 %v340_v15, %v312_v14  ;;  %v317_v19 = vor.u32 %v339_v16, %v314_v17 }
  0x16   : > { %225 = vmatpush.bf16.msra.mxu0 %v321_v12 }
  0x17   : > { %238 = vmatpush.bf16.msra.mxu1 %v325_v13 }
  0x1a   : > { %226 = vmatpush.bf16.msra.mxu0 %v313_v18 }
  0x1b   : > { %239 = vmatpush.bf16.msra.mxu1 %v317_v19 }
  0x1d   : > { %334 = vmatmul.msk.bf16.vlgmr.msra.gmra.mxu0 %vm215_vm0, %v172_v20 }
  0x1e   : > { %335 = vmatmul.msk.bf16.vlgmr.msra.gmra.mxu1 %vm215_vm0, %v172_v20 }
  0x7f   : > { %v183_v21 = vpop.permute.xlu0 %182 }
  0x9a   : > { %v228_v22 = vpop.f32.mrf.mxu0 }
  0x9b   : > { %v229_v23 = vadd.f32 %v228_v22, %v183_v21  ;;  %v241_v24 = vpop.f32.mrf.mxu1 }
  0x9c   : > { %v242_v25 = vadd.f32 %v241_v24, %v183_v21 }
  0x9d   : > { %245 = vst [vmem:[%s170_s25] sm:$0xff] %v229_v23 }
  0x9e   : > { %246 = vst [vmem:[%s170_s25 + $0x8] sm:$0xff] %v242_v25 }
  0xa2   : > { %v230_v26 = vpop.f32.mrf.mxu0 }
  0xa3   : > { %v243_v27 = vpop.f32.mrf.mxu1 }
  0xa4 PF: > { %s13_s12 = sadd.s32 1, %s362_s12  }
  0xa5   : > { %p10_p4 = scmp.ge.s32.totalorder %s13_s12, 4  }
  0xa7   :  { %12 = sbr.rel (!%p10_p4) target bundleno = 1 (0x1), region = 62 }

</bundles_post_ra>
